<compile_context>
chip_gen: v7x
topology: tpu7x:2x2x1
jax: 0.10.0
libtpu: 0.0.40
codegen_flags: <defaults>
</compile_context>

<pallas_src>
import functools

import jax
import jax.numpy as jnp
from jax.experimental import pallas as pl
from jax.experimental.pallas import tpu as pltpu


def _lstm_kernel(x_ref, wih_t_ref, whh_t_ref, b_ref, wlin_t_ref, blin_ref,
                 h0_ref, c0_ref,
                 out_ref, hn_ref, cn_ref,
                 h_seq_sc, *, seq_len, batch, hidden_size):
    H = hidden_size
    B = batch

    # (1) Hoisted input projection: one matmul for all timesteps, bias
    #     (b_ih + b_hh) folded in.  x_ref is (seq*B, I).
    x_proj = (jnp.dot(x_ref[...], wih_t_ref[...],
                      preferred_element_type=jnp.float32)
              + b_ref[...])                                  # (seq*B, 4H)

    whh_t = whh_t_ref[...]                                   # (H, 4H), load once

    h = h0_ref[...]                                          # (B, H)
    c = c0_ref[...]                                          # (B, H)

    # (2) Serial recurrence, fully unrolled (seq_len is a small static
    #     constant).  Only h @ W_hh^T + activations remain on the critical
    #     path; gate order is i, f, g, o (PyTorch).
    for t in range(seq_len):
        gates = x_proj[t * B:(t + 1) * B, :] + jnp.dot(
            h, whh_t, preferred_element_type=jnp.float32)    # (B, 4H)
        i_g = jax.nn.sigmoid(gates[:, 0 * H:1 * H])
        f_g = jax.nn.sigmoid(gates[:, 1 * H:2 * H])
        g_g = jnp.tanh(gates[:, 2 * H:3 * H])
        o_g = jax.nn.sigmoid(gates[:, 3 * H:4 * H])
        c = f_g * c + i_g * g_g
        h = o_g * jnp.tanh(c)
        h_seq_sc[t * B:(t + 1) * B, :] = h                   # stage for Linear

    # (3) Final hidden/cell state written exactly once, after the loop.
    hn_ref[...] = h.astype(hn_ref.dtype)
    cn_ref[...] = c.astype(cn_ref.dtype)

    # (4) Deferred Linear head: one matmul over all timesteps and one
    #     lane-dense (128-wide) unmasked store.
    out_ref[...] = (jnp.dot(h_seq_sc[...], wlin_t_ref[...],
                            preferred_element_type=jnp.float32)
                    + blin_ref[...]).astype(out_ref.dtype)


def lstm_net_forward(obs, hidden, params):
    """Pallas implementation of LSTMNet.forward.

    obs:    (seq_len, batch, input_size) float32
    hidden: tuple (h0, c0), each (1, batch, lstm_size) float32
    params: dict with w_ih (4H,I), w_hh (4H,H), b_ih (4H,), b_hh (4H,),
            w_lin (O,H), b_lin (O,)
    returns (out, (h_n, c_n)) matching PyTorch shapes.
    """
    h0, c0 = hidden
    seq_len, batch, input_size = obs.shape
    four_h = params["w_ih"].shape[0]
    H = four_h // 4
    O = params["w_lin"].shape[0]

    # Lane-pad the Linear head so the single output store uses full 128-lane
    # vector stores; slice back to O afterwards.
    O_pad = max(128, ((O + 127) // 128) * 128)

    # Glue: flatten time into rows, pre-transpose weights, combine biases,
    # drop the num_layers=1 axis.
    x_2d = obs.reshape(seq_len * batch, input_size).astype(jnp.float32)
    wih_t = params["w_ih"].T.astype(jnp.float32)              # (I, 4H)
    whh_t = params["w_hh"].T.astype(jnp.float32)              # (H, 4H)
    b = (params["b_ih"] + params["b_hh"]).reshape(1, 4 * H).astype(jnp.float32)
    wlin_t = jnp.zeros((H, O_pad), jnp.float32).at[:, :O].set(
        params["w_lin"].T.astype(jnp.float32))                # (H, O_pad)
    blin = jnp.zeros((1, O_pad), jnp.float32).at[:, :O].set(
        params["b_lin"].astype(jnp.float32))                  # (1, O_pad)
    h0_2d = h0[0].astype(jnp.float32)                         # (B, H)
    c0_2d = c0[0].astype(jnp.float32)                         # (B, H)

    kernel = functools.partial(_lstm_kernel, seq_len=seq_len, batch=batch,
                               hidden_size=H)

    out_pad, h_n, c_n = pl.pallas_call(
        kernel,
        out_shape=(
            jax.ShapeDtypeStruct((seq_len * batch, O_pad), jnp.float32),
            jax.ShapeDtypeStruct((batch, H), jnp.float32),
            jax.ShapeDtypeStruct((batch, H), jnp.float32),
        ),
        grid_spec=pltpu.PrefetchScalarGridSpec(
            num_scalar_prefetch=0,
            grid=(1,),                                        # single invocation
            in_specs=[
                pl.BlockSpec((seq_len * batch, input_size), lambda i: (0, 0)),  # x
                pl.BlockSpec((input_size, 4 * H), lambda i: (0, 0)),            # W_ih^T
                pl.BlockSpec((H, 4 * H), lambda i: (0, 0)),                     # W_hh^T
                pl.BlockSpec((1, 4 * H), lambda i: (0, 0)),                     # b_ih+b_hh
                pl.BlockSpec((H, O_pad), lambda i: (0, 0)),                     # W_lin^T (padded)
                pl.BlockSpec((1, O_pad), lambda i: (0, 0)),                     # b_lin (padded)
                pl.BlockSpec((batch, H), lambda i: (0, 0)),                     # h0
                pl.BlockSpec((batch, H), lambda i: (0, 0)),                     # c0
            ],
            out_specs=[
                pl.BlockSpec((seq_len * batch, O_pad), lambda i: (0, 0)),       # out (padded)
                pl.BlockSpec((batch, H), lambda i: (0, 0)),                     # h_n
                pl.BlockSpec((batch, H), lambda i: (0, 0)),                     # c_n
            ],
            scratch_shapes=[
                pltpu.VMEM((seq_len * batch, H), jnp.float32),  # staged h_t's
            ],
        ),
        compiler_params=pltpu.CompilerParams(
            dimension_semantics=("arbitrary",),
        ),
    )(x_2d, wih_t, whh_t, b, wlin_t, blin, h0_2d, c0_2d)

    out = out_pad[:, :O].reshape(seq_len, batch, O)
    return out, (h_n[None], c_n[None])


def _reference_forward(obs, hidden, params):
    """Pure-JAX reference implementing PyTorch nn.LSTM + nn.Linear semantics."""
    h = hidden[0][0]
    c = hidden[1][0]
    H = params["w_hh"].shape[1]

    def step(carry, x_t):
        h, c = carry
        gates = (x_t @ params["w_ih"].T + params["b_ih"]
                 + h @ params["w_hh"].T + params["b_hh"])
        i = jax.nn.sigmoid(gates[:, 0 * H:1 * H])
        f = jax.nn.sigmoid(gates[:, 1 * H:2 * H])
        g = jnp.tanh(gates[:, 2 * H:3 * H])
        o = jax.nn.sigmoid(gates[:, 3 * H:4 * H])
        c_new = f * c + i * g
        h_new = o * jnp.tanh(c_new)
        return (h_new, c_new), h_new

    (h_n, c_n), hs = jax.lax.scan(step, (h, c), obs)
    out = hs @ params["w_lin"].T + params["b_lin"]
    return out, (h_n[None], c_n[None])


def _init_params(key, input_size, output_size, lstm_size):
    """Deterministic init matching the PyTorch module's parameter shapes."""
    ks = jax.random.split(key, 6)
    k_lstm = 1.0 / jnp.sqrt(lstm_size)
    k_lin = 1.0 / jnp.sqrt(lstm_size)
    u = lambda k, shape, s: jax.random.uniform(k, shape, jnp.float32, -s, s)
    return {
        "w_ih": u(ks[0], (4 * lstm_size, input_size), k_lstm),
        "w_hh": u(ks[1], (4 * lstm_size, lstm_size), k_lstm),
        "b_ih": u(ks[2], (4 * lstm_size,), k_lstm),
        "b_hh": u(ks[3], (4 * lstm_size,), k_lstm),
        "w_lin": u(ks[4], (output_size, lstm_size), k_lin),
        "b_lin": u(ks[5], (output_size,), k_lin),
    }


if __name__ == "__main__":
    seq_len, batch = 8, 2
    input_size, output_size, lstm_size = 4, 8, 32

    key = jax.random.PRNGKey(0)
    k_obs, k_params = jax.random.split(key)

    params = _init_params(k_params, input_size, output_size, lstm_size)
    obs = jax.random.normal(k_obs, (seq_len, batch, input_size), jnp.float32)
    # get_h0(batch_size) equivalent: zero initial hidden/cell state.
    h0 = jnp.zeros((1, batch, lstm_size), jnp.float32)
    c0 = jnp.zeros((1, batch, lstm_size), jnp.float32)

    out, (h_n, c_n) = lstm_net_forward(obs, (h0, c0), params)
    jax.block_until_ready((out, h_n, c_n))

    ref_out, (ref_h, ref_c) = _reference_forward(obs, (h0, c0), params)
    assert out.shape == (seq_len, batch, output_size)
    assert h_n.shape == (1, batch, lstm_size) and c_n.shape == (1, batch, lstm_size)
    assert jnp.allclose(out, ref_out, atol=1e-5, rtol=1e-5)
    assert jnp.allclose(h_n, ref_h, atol=1e-5, rtol=1e-5)
    assert jnp.allclose(c_n, ref_c, atol=1e-5, rtol=1e-5)

    print("KERNEL_OK")
</pallas_src>

<mosaic_0001>
module attributes {stable_mosaic.version = 11 : i64} {
  func.func @_lstm_kernel(%arg0: i32, %arg1: memref<16x4xf32, #tpu.memory_space<vmem>>, %arg2: memref<4x128xf32, #tpu.memory_space<vmem>>, %arg3: memref<32x128xf32, #tpu.memory_space<vmem>>, %arg4: memref<1x128xf32, #tpu.memory_space<vmem>>, %arg5: memref<32x128xf32, #tpu.memory_space<vmem>>, %arg6: memref<1x128xf32, #tpu.memory_space<vmem>>, %arg7: memref<2x32xf32, #tpu.memory_space<vmem>>, %arg8: memref<2x32xf32, #tpu.memory_space<vmem>>, %arg9: memref<16x128xf32, #tpu.memory_space<vmem>>, %arg10: memref<2x32xf32, #tpu.memory_space<vmem>>, %arg11: memref<2x32xf32, #tpu.memory_space<vmem>>, %arg12: memref<16x32xf32, #tpu.memory_space<vmem>>) attributes {dimension_semantics = [#tpu.dimension_semantics<arbitrary>], iteration_bounds = array<i64: 1>, scalar_prefetch = 0 : i64, scratch_operands = 1 : i64, tpu.core_type = #tpu.core_type<tc>, window_params = [{pipeline_mode = #tpu.pipeline_mode<synchronous>, transform_indices = @transform_0, window_bounds = array<i64: 16, 4>}, {pipeline_mode = #tpu.pipeline_mode<synchronous>, transform_indices = @transform_1, window_bounds = array<i64: 4, 128>}, {pipeline_mode = #tpu.pipeline_mode<synchronous>, transform_indices = @transform_2, window_bounds = array<i64: 32, 128>}, {pipeline_mode = #tpu.pipeline_mode<synchronous>, transform_indices = @transform_3, window_bounds = array<i64: 1, 128>}, {pipeline_mode = #tpu.pipeline_mode<synchronous>, transform_indices = @transform_4, window_bounds = array<i64: 32, 128>}, {pipeline_mode = #tpu.pipeline_mode<synchronous>, transform_indices = @transform_5, window_bounds = array<i64: 1, 128>}, {pipeline_mode = #tpu.pipeline_mode<synchronous>, transform_indices = @transform_6, window_bounds = array<i64: 2, 32>}, {pipeline_mode = #tpu.pipeline_mode<synchronous>, transform_indices = @transform_7, window_bounds = array<i64: 2, 32>}, {pipeline_mode = #tpu.pipeline_mode<synchronous>, transform_indices = @transform_8, window_bounds = array<i64: 16, 128>}, {pipeline_mode = #tpu.pipeline_mode<synchronous>, transform_indices = @transform_9, window_bounds = array<i64: 2, 32>}, {pipeline_mode = #tpu.pipeline_mode<synchronous>, transform_indices = @transform_10, window_bounds = array<i64: 2, 32>}]} {
    %c0 = arith.constant 0 : index
    %c0_0 = arith.constant 0 : index
    %0 = vector.load %arg1[%c0, %c0_0] : memref<16x4xf32, #tpu.memory_space<vmem>>, vector<16x4xf32>
    %c0_1 = arith.constant 0 : index
    %c0_2 = arith.constant 0 : index
    %1 = vector.load %arg2[%c0_1, %c0_2] : memref<4x128xf32, #tpu.memory_space<vmem>>, vector<4x128xf32>
    %cst = arith.constant dense<0.000000e+00> : vector<16x128xf32>
    %2 = tpu.matmul %0, %1, %cst {dimension_numbers = #tpu.dot_dimension_numbers<[1], [0], [0], [1], [0, 0, 1, 1], [], []>} : vector<16x4xf32>, vector<4x128xf32>, vector<16x128xf32> -> vector<16x128xf32>
    %c0_3 = arith.constant 0 : index
    %c0_4 = arith.constant 0 : index
    %3 = vector.load %arg4[%c0_3, %c0_4] : memref<1x128xf32, #tpu.memory_space<vmem>>, vector<1x128xf32>
    %4 = vector.broadcast %3 : vector<1x128xf32> to vector<16x128xf32>
    %5 = arith.addf %2, %4 : vector<16x128xf32>
    %c0_5 = arith.constant 0 : index
    %c0_6 = arith.constant 0 : index
    %6 = vector.load %arg3[%c0_5, %c0_6] : memref<32x128xf32, #tpu.memory_space<vmem>>, vector<32x128xf32>
    %c0_7 = arith.constant 0 : index
    %c0_8 = arith.constant 0 : index
    %7 = vector.load %arg7[%c0_7, %c0_8] : memref<2x32xf32, #tpu.memory_space<vmem>>, vector<2x32xf32>
    %c0_9 = arith.constant 0 : index
    %c0_10 = arith.constant 0 : index
    %8 = vector.load %arg8[%c0_9, %c0_10] : memref<2x32xf32, #tpu.memory_space<vmem>>, vector<2x32xf32>
    %9 = vector.extract_strided_slice %5 {offsets = [0, 0], sizes = [2, 128], strides = [1, 1]} : vector<16x128xf32> to vector<2x128xf32>
    %cst_11 = arith.constant dense<0.000000e+00> : vector<2x128xf32>
    %10 = tpu.matmul %7, %6, %cst_11 {dimension_numbers = #tpu.dot_dimension_numbers<[1], [0], [0], [1], [0, 0, 1, 1], [], []>} : vector<2x32xf32>, vector<32x128xf32>, vector<2x128xf32> -> vector<2x128xf32>
    %11 = arith.addf %9, %10 : vector<2x128xf32>
    %12 = vector.extract_strided_slice %11 {offsets = [0, 0], sizes = [2, 32], strides = [1, 1]} : vector<2x128xf32> to vector<2x32xf32>
    %13 = arith.negf %12 : vector<2x32xf32>
    %14 = math.exp %13 : vector<2x32xf32>
    %cst_12 = arith.constant 1.000000e+00 : f32
    %15 = vector.broadcast %cst_12 : f32 to vector<2x32xf32>
    %16 = arith.addf %15, %14 : vector<2x32xf32>
    %17 = arith.divf %15, %16 : vector<2x32xf32>
    %18 = vector.extract_strided_slice %11 {offsets = [0, 32], sizes = [2, 32], strides = [1, 1]} : vector<2x128xf32> to vector<2x32xf32>
    %19 = arith.negf %18 : vector<2x32xf32>
    %20 = math.exp %19 : vector<2x32xf32>
    %cst_13 = arith.constant 1.000000e+00 : f32
    %21 = vector.broadcast %cst_13 : f32 to vector<2x32xf32>
    %22 = arith.addf %21, %20 : vector<2x32xf32>
    %23 = arith.divf %21, %22 : vector<2x32xf32>
    %24 = vector.extract_strided_slice %11 {offsets = [0, 64], sizes = [2, 32], strides = [1, 1]} : vector<2x128xf32> to vector<2x32xf32>
    %25 = math.tanh %24 : vector<2x32xf32>
    %26 = vector.extract_strided_slice %11 {offsets = [0, 96], sizes = [2, 32], strides = [1, 1]} : vector<2x128xf32> to vector<2x32xf32>
    %27 = arith.negf %26 : vector<2x32xf32>
    %28 = math.exp %27 : vector<2x32xf32>
    %cst_14 = arith.constant 1.000000e+00 : f32
    %29 = vector.broadcast %cst_14 : f32 to vector<2x32xf32>
    %30 = arith.addf %29, %28 : vector<2x32xf32>
    %31 = arith.divf %29, %30 : vector<2x32xf32>
    %32 = arith.mulf %23, %8 : vector<2x32xf32>
    %33 = arith.mulf %17, %25 : vector<2x32xf32>
    %34 = arith.addf %32, %33 : vector<2x32xf32>
    %35 = math.tanh %34 : vector<2x32xf32>
    %36 = arith.mulf %31, %35 : vector<2x32xf32>
    %c0_15 = arith.constant 0 : index
    %c0_16 = arith.constant 0 : index
    %37 = vector.load %arg12[%c0_15, %c0_16] : memref<16x32xf32, #tpu.memory_space<vmem>>, vector<2x32xf32>
    tpu.vector_store %arg12[%c0_15, %c0_16], %36 {strides = array<i32>} : memref<16x32xf32, #tpu.memory_space<vmem>>, vector<2x32xf32>,
    %38 = vector.extract_strided_slice %5 {offsets = [2, 0], sizes = [2, 128], strides = [1, 1]} : vector<16x128xf32> to vector<2x128xf32>
    %cst_17 = arith.constant dense<0.000000e+00> : vector<2x128xf32>
    %39 = tpu.matmul %36, %6, %cst_17 {dimension_numbers = #tpu.dot_dimension_numbers<[1], [0], [0], [1], [0, 0, 1, 1], [], []>} : vector<2x32xf32>, vector<32x128xf32>, vector<2x128xf32> -> vector<2x128xf32>
    %40 = arith.addf %38, %39 : vector<2x128xf32>
    %41 = vector.extract_strided_slice %40 {offsets = [0, 0], sizes = [2, 32], strides = [1, 1]} : vector<2x128xf32> to vector<2x32xf32>
    %42 = arith.negf %41 : vector<2x32xf32>
    %43 = math.exp %42 : vector<2x32xf32>
    %cst_18 = arith.constant 1.000000e+00 : f32
    %44 = vector.broadcast %cst_18 : f32 to vector<2x32xf32>
    %45 = arith.addf %44, %43 : vector<2x32xf32>
    %46 = arith.divf %44, %45 : vector<2x32xf32>
    %47 = vector.extract_strided_slice %40 {offsets = [0, 32], sizes = [2, 32], strides = [1, 1]} : vector<2x128xf32> to vector<2x32xf32>
    %48 = arith.negf %47 : vector<2x32xf32>
    %49 = math.exp %48 : vector<2x32xf32>
    %cst_19 = arith.constant 1.000000e+00 : f32
    %50 = vector.broadcast %cst_19 : f32 to vector<2x32xf32>
    %51 = arith.addf %50, %49 : vector<2x32xf32>
    %52 = arith.divf %50, %51 : vector<2x32xf32>
    %53 = vector.extract_strided_slice %40 {offsets = [0, 64], sizes = [2, 32], strides = [1, 1]} : vector<2x128xf32> to vector<2x32xf32>
    %54 = math.tanh %53 : vector<2x32xf32>
    %55 = vector.extract_strided_slice %40 {offsets = [0, 96], sizes = [2, 32], strides = [1, 1]} : vector<2x128xf32> to vector<2x32xf32>
    %56 = arith.negf %55 : vector<2x32xf32>
    %57 = math.exp %56 : vector<2x32xf32>
    %cst_20 = arith.constant 1.000000e+00 : f32
    %58 = vector.broadcast %cst_20 : f32 to vector<2x32xf32>
    %59 = arith.addf %58, %57 : vector<2x32xf32>
    %60 = arith.divf %58, %59 : vector<2x32xf32>
    %61 = arith.mulf %52, %34 : vector<2x32xf32>
    %62 = arith.mulf %46, %54 : vector<2x32xf32>
    %63 = arith.addf %61, %62 : vector<2x32xf32>
    %64 = math.tanh %63 : vector<2x32xf32>
    %65 = arith.mulf %60, %64 : vector<2x32xf32>
    %c2 = arith.constant 2 : index
    %c0_21 = arith.constant 0 : index
    %66 = vector.load %arg12[%c2, %c0_21] : memref<16x32xf32, #tpu.memory_space<vmem>>, vector<2x32xf32>
    tpu.vector_store %arg12[%c2, %c0_21], %65 {strides = array<i32>} : memref<16x32xf32, #tpu.memory_space<vmem>>, vector<2x32xf32>,
    %67 = vector.extract_strided_slice %5 {offsets = [4, 0], sizes = [2, 128], strides = [1, 1]} : vector<16x128xf32> to vector<2x128xf32>
    %cst_22 = arith.constant dense<0.000000e+00> : vector<2x128xf32>
    %68 = tpu.matmul %65, %6, %cst_22 {dimension_numbers = #tpu.dot_dimension_numbers<[1], [0], [0], [1], [0, 0, 1, 1], [], []>} : vector<2x32xf32>, vector<32x128xf32>, vector<2x128xf32> -> vector<2x128xf32>
    %69 = arith.addf %67, %68 : vector<2x128xf32>
    %70 = vector.extract_strided_slice %69 {offsets = [0, 0], sizes = [2, 32], strides = [1, 1]} : vector<2x128xf32> to vector<2x32xf32>
    %71 = arith.negf %70 : vector<2x32xf32>
    %72 = math.exp %71 : vector<2x32xf32>
    %cst_23 = arith.constant 1.000000e+00 : f32
    %73 = vector.broadcast %cst_23 : f32 to vector<2x32xf32>
    %74 = arith.addf %73, %72 : vector<2x32xf32>
    %75 = arith.divf %73, %74 : vector<2x32xf32>
    %76 = vector.extract_strided_slice %69 {offsets = [0, 32], sizes = [2, 32], strides = [1, 1]} : vector<2x128xf32> to vector<2x32xf32>
    %77 = arith.negf %76 : vector<2x32xf32>
    %78 = math.exp %77 : vector<2x32xf32>
    %cst_24 = arith.constant 1.000000e+00 : f32
    %79 = vector.broadcast %cst_24 : f32 to vector<2x32xf32>
    %80 = arith.addf %79, %78 : vector<2x32xf32>
    %81 = arith.divf %79, %80 : vector<2x32xf32>
    %82 = vector.extract_strided_slice %69 {offsets = [0, 64], sizes = [2, 32], strides = [1, 1]} : vector<2x128xf32> to vector<2x32xf32>
    %83 = math.tanh %82 : vector<2x32xf32>
    %84 = vector.extract_strided_slice %69 {offsets = [0, 96], sizes = [2, 32], strides = [1, 1]} : vector<2x128xf32> to vector<2x32xf32>
    %85 = arith.negf %84 : vector<2x32xf32>
    %86 = math.exp %85 : vector<2x32xf32>
    %cst_25 = arith.constant 1.000000e+00 : f32
    %87 = vector.broadcast %cst_25 : f32 to vector<2x32xf32>
    %88 = arith.addf %87, %86 : vector<2x32xf32>
    %89 = arith.divf %87, %88 : vector<2x32xf32>
    %90 = arith.mulf %81, %63 : vector<2x32xf32>
    %91 = arith.mulf %75, %83 : vector<2x32xf32>
    %92 = arith.addf %90, %91 : vector<2x32xf32>
    %93 = math.tanh %92 : vector<2x32xf32>
    %94 = arith.mulf %89, %93 : vector<2x32xf32>
    %c4 = arith.constant 4 : index
    %c0_26 = arith.constant 0 : index
    %95 = vector.load %arg12[%c4, %c0_26] : memref<16x32xf32, #tpu.memory_space<vmem>>, vector<2x32xf32>
    tpu.vector_store %arg12[%c4, %c0_26], %94 {strides = array<i32>} : memref<16x32xf32, #tpu.memory_space<vmem>>, vector<2x32xf32>,
    %96 = vector.extract_strided_slice %5 {offsets = [6, 0], sizes = [2, 128], strides = [1, 1]} : vector<16x128xf32> to vector<2x128xf32>
    %cst_27 = arith.constant dense<0.000000e+00> : vector<2x128xf32>
    %97 = tpu.matmul %94, %6, %cst_27 {dimension_numbers = #tpu.dot_dimension_numbers<[1], [0], [0], [1], [0, 0, 1, 1], [], []>} : vector<2x32xf32>, vector<32x128xf32>, vector<2x128xf32> -> vector<2x128xf32>
    %98 = arith.addf %96, %97 : vector<2x128xf32>
    %99 = vector.extract_strided_slice %98 {offsets = [0, 0], sizes = [2, 32], strides = [1, 1]} : vector<2x128xf32> to vector<2x32xf32>
    %100 = arith.negf %99 : vector<2x32xf32>
    %101 = math.exp %100 : vector<2x32xf32>
    %cst_28 = arith.constant 1.000000e+00 : f32
    %102 = vector.broadcast %cst_28 : f32 to vector<2x32xf32>
    %103 = arith.addf %102, %101 : vector<2x32xf32>
    %104 = arith.divf %102, %103 : vector<2x32xf32>
    %105 = vector.extract_strided_slice %98 {offsets = [0, 32], sizes = [2, 32], strides = [1, 1]} : vector<2x128xf32> to vector<2x32xf32>
    %106 = arith.negf %105 : vector<2x32xf32>
    %107 = math.exp %106 : vector<2x32xf32>
    %cst_29 = arith.constant 1.000000e+00 : f32
    %108 = vector.broadcast %cst_29 : f32 to vector<2x32xf32>
    %109 = arith.addf %108, %107 : vector<2x32xf32>
    %110 = arith.divf %108, %109 : vector<2x32xf32>
    %111 = vector.extract_strided_slice %98 {offsets = [0, 64], sizes = [2, 32], strides = [1, 1]} : vector<2x128xf32> to vector<2x32xf32>
    %112 = math.tanh %111 : vector<2x32xf32>
    %113 = vector.extract_strided_slice %98 {offsets = [0, 96], sizes = [2, 32], strides = [1, 1]} : vector<2x128xf32> to vector<2x32xf32>
    %114 = arith.negf %113 : vector<2x32xf32>
    %115 = math.exp %114 : vector<2x32xf32>
    %cst_30 = arith.constant 1.000000e+00 : f32
    %116 = vector.broadcast %cst_30 : f32 to vector<2x32xf32>
    %117 = arith.addf %116, %115 : vector<2x32xf32>
    %118 = arith.divf %116, %117 : vector<2x32xf32>
    %119 = arith.mulf %110, %92 : vector<2x32xf32>
    %120 = arith.mulf %104, %112 : vector<2x32xf32>
    %121 = arith.addf %119, %120 : vector<2x32xf32>
    %122 = math.tanh %121 : vector<2x32xf32>
    %123 = arith.mulf %118, %122 : vector<2x32xf32>
    %c6 = arith.constant 6 : index
    %c0_31 = arith.constant 0 : index
    %124 = vector.load %arg12[%c6, %c0_31] : memref<16x32xf32, #tpu.memory_space<vmem>>, vector<2x32xf32>
    tpu.vector_store %arg12[%c6, %c0_31], %123 {strides = array<i32>} : memref<16x32xf32, #tpu.memory_space<vmem>>, vector<2x32xf32>,
    %125 = vector.extract_strided_slice %5 {offsets = [8, 0], sizes = [2, 128], strides = [1, 1]} : vector<16x128xf32> to vector<2x128xf32>
    %cst_32 = arith.constant dense<0.000000e+00> : vector<2x128xf32>
    %126 = tpu.matmul %123, %6, %cst_32 {dimension_numbers = #tpu.dot_dimension_numbers<[1], [0], [0], [1], [0, 0, 1, 1], [], []>} : vector<2x32xf32>, vector<32x128xf32>, vector<2x128xf32> -> vector<2x128xf32>
    %127 = arith.addf %125, %126 : vector<2x128xf32>
    %128 = vector.extract_strided_slice %127 {offsets = [0, 0], sizes = [2, 32], strides = [1, 1]} : vector<2x128xf32> to vector<2x32xf32>
    %129 = arith.negf %128 : vector<2x32xf32>
    %130 = math.exp %129 : vector<2x32xf32>
    %cst_33 = arith.constant 1.000000e+00 : f32
    %131 = vector.broadcast %cst_33 : f32 to vector<2x32xf32>
    %132 = arith.addf %131, %130 : vector<2x32xf32>
    %133 = arith.divf %131, %132 : vector<2x32xf32>
    %134 = vector.extract_strided_slice %127 {offsets = [0, 32], sizes = [2, 32], strides = [1, 1]} : vector<2x128xf32> to vector<2x32xf32>
    %135 = arith.negf %134 : vector<2x32xf32>
    %136 = math.exp %135 : vector<2x32xf32>
    %cst_34 = arith.constant 1.000000e+00 : f32
    %137 = vector.broadcast %cst_34 : f32 to vector<2x32xf32>
    %138 = arith.addf %137, %136 : vector<2x32xf32>
    %139 = arith.divf %137, %138 : vector<2x32xf32>
    %140 = vector.extract_strided_slice %127 {offsets = [0, 64], sizes = [2, 32], strides = [1, 1]} : vector<2x128xf32> to vector<2x32xf32>
    %141 = math.tanh %140 : vector<2x32xf32>
    %142 = vector.extract_strided_slice %127 {offsets = [0, 96], sizes = [2, 32], strides = [1, 1]} : vector<2x128xf32> to vector<2x32xf32>
    %143 = arith.negf %142 : vector<2x32xf32>
    %144 = math.exp %143 : vector<2x32xf32>
    %cst_35 = arith.constant 1.000000e+00 : f32
    %145 = vector.broadcast %cst_35 : f32 to vector<2x32xf32>
    %146 = arith.addf %145, %144 : vector<2x32xf32>
    %147 = arith.divf %145, %146 : vector<2x32xf32>
    %148 = arith.mulf %139, %121 : vector<2x32xf32>
    %149 = arith.mulf %133, %141 : vector<2x32xf32>
    %150 = arith.addf %148, %149 : vector<2x32xf32>
    %151 = math.tanh %150 : vector<2x32xf32>
    %152 = arith.mulf %147, %151 : vector<2x32xf32>
    %c8 = arith.constant 8 : index
    %c0_36 = arith.constant 0 : index
    %153 = vector.load %arg12[%c8, %c0_36] : memref<16x32xf32, #tpu.memory_space<vmem>>, vector<2x32xf32>
    tpu.vector_store %arg12[%c8, %c0_36], %152 {strides = array<i32>} : memref<16x32xf32, #tpu.memory_space<vmem>>, vector<2x32xf32>,
    %154 = vector.extract_strided_slice %5 {offsets = [10, 0], sizes = [2, 128], strides = [1, 1]} : vector<16x128xf32> to vector<2x128xf32>
    %cst_37 = arith.constant dense<0.000000e+00> : vector<2x128xf32>
    %155 = tpu.matmul %152, %6, %cst_37 {dimension_numbers = #tpu.dot_dimension_numbers<[1], [0], [0], [1], [0, 0, 1, 1], [], []>} : vector<2x32xf32>, vector<32x128xf32>, vector<2x128xf32> -> vector<2x128xf32>
    %156 = arith.addf %154, %155 : vector<2x128xf32>
    %157 = vector.extract_strided_slice %156 {offsets = [0, 0], sizes = [2, 32], strides = [1, 1]} : vector<2x128xf32> to vector<2x32xf32>
    %158 = arith.negf %157 : vector<2x32xf32>
    %159 = math.exp %158 : vector<2x32xf32>
    %cst_38 = arith.constant 1.000000e+00 : f32
    %160 = vector.broadcast %cst_38 : f32 to vector<2x32xf32>
    %161 = arith.addf %160, %159 : vector<2x32xf32>
    %162 = arith.divf %160, %161 : vector<2x32xf32>
    %163 = vector.extract_strided_slice %156 {offsets = [0, 32], sizes = [2, 32], strides = [1, 1]} : vector<2x128xf32> to vector<2x32xf32>
    %164 = arith.negf %163 : vector<2x32xf32>
    %165 = math.exp %164 : vector<2x32xf32>
    %cst_39 = arith.constant 1.000000e+00 : f32
    %166 = vector.broadcast %cst_39 : f32 to vector<2x32xf32>
    %167 = arith.addf %166, %165 : vector<2x32xf32>
    %168 = arith.divf %166, %167 : vector<2x32xf32>
    %169 = vector.extract_strided_slice %156 {offsets = [0, 64], sizes = [2, 32], strides = [1, 1]} : vector<2x128xf32> to vector<2x32xf32>
    %170 = math.tanh %169 : vector<2x32xf32>
    %171 = vector.extract_strided_slice %156 {offsets = [0, 96], sizes = [2, 32], strides = [1, 1]} : vector<2x128xf32> to vector<2x32xf32>
    %172 = arith.negf %171 : vector<2x32xf32>
    %173 = math.exp %172 : vector<2x32xf32>
    %cst_40 = arith.constant 1.000000e+00 : f32
    %174 = vector.broadcast %cst_40 : f32 to vector<2x32xf32>
    %175 = arith.addf %174, %173 : vector<2x32xf32>
    %176 = arith.divf %174, %175 : vector<2x32xf32>
    %177 = arith.mulf %168, %150 : vector<2x32xf32>
    %178 = arith.mulf %162, %170 : vector<2x32xf32>
    %179 = arith.addf %177, %178 : vector<2x32xf32>
    %180 = math.tanh %179 : vector<2x32xf32>
    %181 = arith.mulf %176, %180 : vector<2x32xf32>
    %c10 = arith.constant 10 : index
    %c0_41 = arith.constant 0 : index
    %182 = vector.load %arg12[%c10, %c0_41] : memref<16x32xf32, #tpu.memory_space<vmem>>, vector<2x32xf32>
    tpu.vector_store %arg12[%c10, %c0_41], %181 {strides = array<i32>} : memref<16x32xf32, #tpu.memory_space<vmem>>, vector<2x32xf32>,
    %183 = vector.extract_strided_slice %5 {offsets = [12, 0], sizes = [2, 128], strides = [1, 1]} : vector<16x128xf32> to vector<2x128xf32>
    %cst_42 = arith.constant dense<0.000000e+00> : vector<2x128xf32>
    %184 = tpu.matmul %181, %6, %cst_42 {dimension_numbers = #tpu.dot_dimension_numbers<[1], [0], [0], [1], [0, 0, 1, 1], [], []>} : vector<2x32xf32>, vector<32x128xf32>, vector<2x128xf32> -> vector<2x128xf32>
    %185 = arith.addf %183, %184 : vector<2x128xf32>
    %186 = vector.extract_strided_slice %185 {offsets = [0, 0], sizes = [2, 32], strides = [1, 1]} : vector<2x128xf32> to vector<2x32xf32>
    %187 = arith.negf %186 : vector<2x32xf32>
    %188 = math.exp %187 : vector<2x32xf32>
    %cst_43 = arith.constant 1.000000e+00 : f32
    %189 = vector.broadcast %cst_43 : f32 to vector<2x32xf32>
    %190 = arith.addf %189, %188 : vector<2x32xf32>
    %191 = arith.divf %189, %190 : vector<2x32xf32>
    %192 = vector.extract_strided_slice %185 {offsets = [0, 32], sizes = [2, 32], strides = [1, 1]} : vector<2x128xf32> to vector<2x32xf32>
    %193 = arith.negf %192 : vector<2x32xf32>
    %194 = math.exp %193 : vector<2x32xf32>
    %cst_44 = arith.constant 1.000000e+00 : f32
    %195 = vector.broadcast %cst_44 : f32 to vector<2x32xf32>
    %196 = arith.addf %195, %194 : vector<2x32xf32>
    %197 = arith.divf %195, %196 : vector<2x32xf32>
    %198 = vector.extract_strided_slice %185 {offsets = [0, 64], sizes = [2, 32], strides = [1, 1]} : vector<2x128xf32> to vector<2x32xf32>
    %199 = math.tanh %198 : vector<2x32xf32>
    %200 = vector.extract_strided_slice %185 {offsets = [0, 96], sizes = [2, 32], strides = [1, 1]} : vector<2x128xf32> to vector<2x32xf32>
    %201 = arith.negf %200 : vector<2x32xf32>
    %202 = math.exp %201 : vector<2x32xf32>
    %cst_45 = arith.constant 1.000000e+00 : f32
    %203 = vector.broadcast %cst_45 : f32 to vector<2x32xf32>
    %204 = arith.addf %203, %202 : vector<2x32xf32>
    %205 = arith.divf %203, %204 : vector<2x32xf32>
    %206 = arith.mulf %197, %179 : vector<2x32xf32>
    %207 = arith.mulf %191, %199 : vector<2x32xf32>
    %208 = arith.addf %206, %207 : vector<2x32xf32>
    %209 = math.tanh %208 : vector<2x32xf32>
    %210 = arith.mulf %205, %209 : vector<2x32xf32>
    %c12 = arith.constant 12 : index
    %c0_46 = arith.constant 0 : index
    %211 = vector.load %arg12[%c12, %c0_46] : memref<16x32xf32, #tpu.memory_space<vmem>>, vector<2x32xf32>
    tpu.vector_store %arg12[%c12, %c0_46], %210 {strides = array<i32>} : memref<16x32xf32, #tpu.memory_space<vmem>>, vector<2x32xf32>,
    %212 = vector.extract_strided_slice %5 {offsets = [14, 0], sizes = [2, 128], strides = [1, 1]} : vector<16x128xf32> to vector<2x128xf32>
    %cst_47 = arith.constant dense<0.000000e+00> : vector<2x128xf32>
    %213 = tpu.matmul %210, %6, %cst_47 {dimension_numbers = #tpu.dot_dimension_numbers<[1], [0], [0], [1], [0, 0, 1, 1], [], []>} : vector<2x32xf32>, vector<32x128xf32>, vector<2x128xf32> -> vector<2x128xf32>
    %214 = arith.addf %212, %213 : vector<2x128xf32>
    %215 = vector.extract_strided_slice %214 {offsets = [0, 0], sizes = [2, 32], strides = [1, 1]} : vector<2x128xf32> to vector<2x32xf32>
    %216 = arith.negf %215 : vector<2x32xf32>
    %217 = math.exp %216 : vector<2x32xf32>
    %cst_48 = arith.constant 1.000000e+00 : f32
    %218 = vector.broadcast %cst_48 : f32 to vector<2x32xf32>
    %219 = arith.addf %218, %217 : vector<2x32xf32>
    %220 = arith.divf %218, %219 : vector<2x32xf32>
    %221 = vector.extract_strided_slice %214 {offsets = [0, 32], sizes = [2, 32], strides = [1, 1]} : vector<2x128xf32> to vector<2x32xf32>
    %222 = arith.negf %221 : vector<2x32xf32>
    %223 = math.exp %222 : vector<2x32xf32>
    %cst_49 = arith.constant 1.000000e+00 : f32
    %224 = vector.broadcast %cst_49 : f32 to vector<2x32xf32>
    %225 = arith.addf %224, %223 : vector<2x32xf32>
    %226 = arith.divf %224, %225 : vector<2x32xf32>
    %227 = vector.extract_strided_slice %214 {offsets = [0, 64], sizes = [2, 32], strides = [1, 1]} : vector<2x128xf32> to vector<2x32xf32>
    %228 = math.tanh %227 : vector<2x32xf32>
    %229 = vector.extract_strided_slice %214 {offsets = [0, 96], sizes = [2, 32], strides = [1, 1]} : vector<2x128xf32> to vector<2x32xf32>
    %230 = arith.negf %229 : vector<2x32xf32>
    %231 = math.exp %230 : vector<2x32xf32>
    %cst_50 = arith.constant 1.000000e+00 : f32
    %232 = vector.broadcast %cst_50 : f32 to vector<2x32xf32>
    %233 = arith.addf %232, %231 : vector<2x32xf32>
    %234 = arith.divf %232, %233 : vector<2x32xf32>
    %235 = arith.mulf %226, %208 : vector<2x32xf32>
    %236 = arith.mulf %220, %228 : vector<2x32xf32>
    %237 = arith.addf %235, %236 : vector<2x32xf32>
    %238 = math.tanh %237 : vector<2x32xf32>
    %239 = arith.mulf %234, %238 : vector<2x32xf32>
    %c14 = arith.constant 14 : index
    %c0_51 = arith.constant 0 : index
    %240 = vector.load %arg12[%c14, %c0_51] : memref<16x32xf32, #tpu.memory_space<vmem>>, vector<2x32xf32>
    tpu.vector_store %arg12[%c14, %c0_51], %239 {strides = array<i32>} : memref<16x32xf32, #tpu.memory_space<vmem>>, vector<2x32xf32>,
    %c0_52 = arith.constant 0 : index
    %c0_53 = arith.constant 0 : index
    %241 = vector.load %arg10[%c0_52, %c0_53] : memref<2x32xf32, #tpu.memory_space<vmem>>, vector<2x32xf32>
    tpu.vector_store %arg10[%c0_52, %c0_53], %239 {strides = array<i32>} : memref<2x32xf32, #tpu.memory_space<vmem>>, vector<2x32xf32>,
    %c0_54 = arith.constant 0 : index
    %c0_55 = arith.constant 0 : index
    %242 = vector.load %arg11[%c0_54, %c0_55] : memref<2x32xf32, #tpu.memory_space<vmem>>, vector<2x32xf32>
    tpu.vector_store %arg11[%c0_54, %c0_55], %237 {strides = array<i32>} : memref<2x32xf32, #tpu.memory_space<vmem>>, vector<2x32xf32>,
    %c0_56 = arith.constant 0 : index
    %c0_57 = arith.constant 0 : index
    %243 = vector.load %arg12[%c0_56, %c0_57] : memref<16x32xf32, #tpu.memory_space<vmem>>, vector<16x32xf32>
    %c0_58 = arith.constant 0 : index
    %c0_59 = arith.constant 0 : index
    %244 = vector.load %arg5[%c0_58, %c0_59] : memref<32x128xf32, #tpu.memory_space<vmem>>, vector<32x128xf32>
    %cst_60 = arith.constant dense<0.000000e+00> : vector<16x128xf32>
    %245 = tpu.matmul %243, %244, %cst_60 {dimension_numbers = #tpu.dot_dimension_numbers<[1], [0], [0], [1], [0, 0, 1, 1], [], []>} : vector<16x32xf32>, vector<32x128xf32>, vector<16x128xf32> -> vector<16x128xf32>
    %c0_61 = arith.constant 0 : index
    %c0_62 = arith.constant 0 : index
    %246 = vector.load %arg6[%c0_61, %c0_62] : memref<1x128xf32, #tpu.memory_space<vmem>>, vector<1x128xf32>
    %247 = vector.broadcast %246 : vector<1x128xf32> to vector<16x128xf32>
    %248 = arith.addf %245, %247 : vector<16x128xf32>
    %c0_63 = arith.constant 0 : index
    %c0_64 = arith.constant 0 : index
    %249 = vector.load %arg9[%c0_63, %c0_64] : memref<16x128xf32, #tpu.memory_space<vmem>>, vector<16x128xf32>
    tpu.vector_store %arg9[%c0_63, %c0_64], %248 {strides = array<i32>} : memref<16x128xf32, #tpu.memory_space<vmem>>, vector<16x128xf32>,
    return
  }
  func.func @transform_0(%arg0: i32) -> (i32, i32) {
    %c0_i32 = arith.constant 0 : i32
    %c0_i32_0 = arith.constant 0 : i32
    %c0_i32_1 = arith.constant 0 : i32
    return %c0_i32, %c0_i32_0 : i32, i32
  }
  func.func @transform_1(%arg0: i32) -> (i32, i32) {
    %c0_i32 = arith.constant 0 : i32
    %c0_i32_0 = arith.constant 0 : i32
    %c0_i32_1 = arith.constant 0 : i32
    return %c0_i32, %c0_i32_0 : i32, i32
  }
  func.func @transform_2(%arg0: i32) -> (i32, i32) {
    %c0_i32 = arith.constant 0 : i32
    %c0_i32_0 = arith.constant 0 : i32
    %c0_i32_1 = arith.constant 0 : i32
    return %c0_i32, %c0_i32_0 : i32, i32
  }
  func.func @transform_3(%arg0: i32) -> (i32, i32) {
    %c0_i32 = arith.constant 0 : i32
    %c0_i32_0 = arith.constant 0 : i32
    %c0_i32_1 = arith.constant 0 : i32
    return %c0_i32, %c0_i32_0 : i32, i32
  }
  func.func @transform_4(%arg0: i32) -> (i32, i32) {
    %c0_i32 = arith.constant 0 : i32
    %c0_i32_0 = arith.constant 0 : i32
    %c0_i32_1 = arith.constant 0 : i32
    return %c0_i32, %c0_i32_0 : i32, i32
  }
  func.func @transform_5(%arg0: i32) -> (i32, i32) {
    %c0_i32 = arith.constant 0 : i32
    %c0_i32_0 = arith.constant 0 : i32
    %c0_i32_1 = arith.constant 0 : i32
    return %c0_i32, %c0_i32_0 : i32, i32
  }
  func.func @transform_6(%arg0: i32) -> (i32, i32) {
    %c0_i32 = arith.constant 0 : i32
    %c0_i32_0 = arith.constant 0 : i32
    %c0_i32_1 = arith.constant 0 : i32
    return %c0_i32, %c0_i32_0 : i32, i32
  }
  func.func @transform_7(%arg0: i32) -> (i32, i32) {
    %c0_i32 = arith.constant 0 : i32
    %c0_i32_0 = arith.constant 0 : i32
    %c0_i32_1 = arith.constant 0 : i32
    return %c0_i32, %c0_i32_0 : i32, i32
  }
  func.func @transform_8(%arg0: i32) -> (i32, i32) {
    %c0_i32 = arith.constant 0 : i32
    %c0_i32_0 = arith.constant 0 : i32
    %c0_i32_1 = arith.constant 0 : i32
    return %c0_i32, %c0_i32_0 : i32, i32
  }
  func.func @transform_9(%arg0: i32) -> (i32, i32) {
    %c0_i32 = arith.constant 0 : i32
    %c0_i32_0 = arith.constant 0 : i32
    %c0_i32_1 = arith.constant 0 : i32
    return %c0_i32, %c0_i32_0 : i32, i32
  }
  func.func @transform_10(%arg0: i32) -> (i32, i32) {
    %c0_i32 = arith.constant 0 : i32
    %c0_i32_0 = arith.constant 0 : i32
    %c0_i32_1 = arith.constant 0 : i32
    return %c0_i32, %c0_i32_0 : i32, i32
  }
}

</mosaic_0001>

<bundles_post_ra>
// kernel: tpu_custom_call.1
= control target key start
LH: loop header
LB: loop body
LE: loop exit
PB: predicated region body
PF: predicated region fallthrough
CT: control target
= control target key end

     0   :  { %16 = vsyncpa [#allocation4], 0  ;;  %s1925_s0 = inlined_call_operand.vmem [shape: f32[16,4], index: 0, kind: input, shape index: {}]   ;;  %s1926_s1 = inlined_call_operand.hbm [shape: f32[4,128], index: 1, kind: input, shape index: {}]   ;;  %s1927_s2 = inlined_call_operand.hbm [shape: f32[32,128], index: 2, kind: input, shape index: {}]   ;;  %s1928_s3 = inlined_call_operand.vmem [shape: f32[1,128], index: 3, kind: input, shape index: {}]   ;;  %s1929_s4 = inlined_call_operand.vmem [shape: f32[32,128], index: 4, kind: input, shape index: {}]   ;;  %s1930_s5 = inlined_call_operand.vmem [shape: f32[1,128], index: 5, kind: input, shape index: {}]   ;;  %s1931_s6 = inlined_call_operand.vmem [shape: f32[2,32], index: 6, kind: input, shape index: {}]   ;;  %s1932_s7 = inlined_call_operand.vmem [shape: f32[2,32], index: 7, kind: input, shape index: {}]   ;;  %s1933_s8 = inlined_call_operand.hbm [shape: f32[16,128], index: 8, kind: output, shape index: {0}]   ;;  %s1934_s9 = inlined_call_operand.hbm [shape: f32[2,32], index: 9, kind: output, shape index: {1}]   ;;  %s1935_s10 = inlined_call_operand.hbm [shape: f32[2,32], index: 10, kind: output, shape index: {2}]  }
   0x1   :  { %17 = vsyncpa [#allocation7], 0 }
   0x2   :  { %18 = vsyncpa [#allocation5], 0 }
   0x3   :  { %19 = vsyncpa [#allocation10], 0  ;;  %s1616_s13 = smov [#allocation3]   ;;  %s1617_s15 = smov [#allocation6]  }
   0x4   :  { %s28_s14 = sshll.u32 %s1616_s13, 4  ;;  %s37_s16 = sshll.u32 %s1617_s15, 4  ;;  %s29_s14 = int_to_ptr.vmem [resolvable:$true] %s28_s14  ;;  %s1684_s16 = int_to_ptr.vmem [resolvable:$true] %s37_s16 }
   0x5   :  { %s1498_s19 = scalar_lea.hbm %s1926_s1, 64 }
   0x6   :  { %p1499_p0 = scmp.ne.s32.totalorder %s1926_s1, %s1498_s19  ;;  %p1502_p1 = scmp.lt.u32.totalorder %s1498_s19, %s1926_s1 }
   0x8   :  { %p1504_p2 = pnand %p1502_p1, %p1499_p0 }
   0xa   :  { %1507 = shalt.err (!%p1504_p2)
}
   0xb   :  { %s1508_s24 = scalar_lea.vmem %s29_s14, 64  ;;  %p1513_p4 = scmp.lt.s32.totalorder %s29_s14, %s29_s14 }
   0xc   :  { %p1509_p3 = scmp.ne.s32.totalorder %s29_s14, %s1508_s24  ;;  %p1514_p5 = scmp.lt.s32.totalorder %s1508_s24, %s1508_s24 }
   0xe   :  { %p1515_p6 = por %p1514_p5, %p1513_p4 }
  0x10   :  { %p1516_p7 = pnand %p1515_p6, %p1509_p3 }
  0x12   :  { %1519 = shalt.err (!%p1516_p7)
}
  0x13   :  { %31 = dma.hbm_to_vmem [thread:$0]  %s1926_s1, 64, %s29_s14, [#allocation4]  }
  0x14   :  { %s1520_s29 = scalar_lea.hbm %s1927_s2, 512 }
  0x15   :  { %p1521_p8 = scmp.ne.s32.totalorder %s1927_s2, %s1520_s29  ;;  %p1524_p9 = scmp.lt.u32.totalorder %s1520_s29, %s1927_s2 }
  0x17   :  { %p1526_p10 = pnand %p1524_p9, %p1521_p8 }
  0x19   :  { %1529 = shalt.err (!%p1526_p10)
}
  0x1a   :  { %s1530_s15 = scalar_lea.vmem %s1684_s16, 512  ;;  %p1535_p12 = scmp.lt.s32.totalorder %s1684_s16, %s1684_s16 }
  0x1b   :  { %p1531_p11 = scmp.ne.s32.totalorder %s1684_s16, %s1530_s15  ;;  %p1536_p13 = scmp.lt.s32.totalorder %s1530_s15, %s1530_s15 }
  0x1d   :  { %p1537_p0 = por %p1536_p13, %p1535_p12 }
  0x1f   :  { %p1538_p1 = pnand %p1537_p0, %p1531_p11 }
  0x21   :  { %1541 = shalt.err (!%p1538_p1)
}
  0x22   :  { %s1618_s1 = smov 128   ;;  %s1619_s14 = smov 8  }
  0x23   :  { %43 = dma.hbm_to_vmem [thread:$0]  %s1927_s2, 512, %s1684_s16, [#allocation7], %s1618_s1, %s1618_s1, %s1619_s14  }
  0x24   :  { %1608 = dma.done.wait [#allocation4], 64  }
  0x25   :  { %1609 = vsyncadd [#allocation4], 4294967232 }
  0x26   :  { %1610 = dma.done.wait [#allocation7], 512  }
  0x27   :  { %1611 = vsyncadd [#allocation7], 4294966784  ;;  %v1620_v0 = vmov 0.0|0.0   ;;  %vm1621_vm0 = vmmov 0   ;;  %v1622_v1 = vmov 0.0   ;;  %vm77_vm1 = vcmask 1043456  }
  0x28   :  { %1365 = vmatprep.subr.bf16.mxu1 %v1620_v0  ;;  %1274 = vmatprep.mubr.msk.f32.mxu1 %vm1621_vm0, %v1622_v1  ;;  %vm70_vm2 = vcmask 31744   ;;  %v156_v2 = vld [vmem:[#allocation6] sm:$0xff]  ;;  %v157_v3 = vld [vmem:[#allocation6 + $0x8] sm:$0xff]  ;;  %v62_v4 = vld [vmem:[#allocation3] sm:$0xf]  ;;  %vm162_vm3 = vcmask 261120  }
  0x29   :  { %v1721_v5 = vpack.c.bf16 %v157_v3, %v156_v2  ;;  %1261 = vmatprep.subr.msk.mxu0 %vm77_vm1, %v62_v4  ;;  %v60_v6 = vld [vmem:[%s1925_s0] sm:$0xff]  ;;  %v61_v7 = vld [vmem:[%s1925_s0 + $0x8] sm:$0xff]  ;;  %s1623_s23 = smov 64   ;;  %vm269_vm4 = vcmask 254976   ;;  %vm378_vm5 = vcmask 257026   ;;  %vm602_vm6 = vcmask 261126  }
  0x2a   :  { %v158_v8 = vld [vmem:[#allocation6 + $0x10] sm:$0xff]  ;;  %1262 = vmatpush3.msk.msra.mxu0 %vm77_vm1, %v62_v4  ;;  %1263 = vmatprep.mubr.msk.f32.mxu0 %vm70_vm2, %v60_v6  ;;  %v159_v9 = vld [vmem:[#allocation6 + $0x18] sm:$0xff]  ;;  %v160_v11 = vld [vmem:[%s1931_s6] sm:$0x3]  ;;  %vm490_vm7 = vcmask 259076  }
  0x2b   :  { %1367 = vmatpush3.bf16.msra.mxu1 %v1721_v5  ;;  %1264 = vmatmul.mubr.msk.f32.vlgmr.msra.gmra.mrb[0].mxu0 %vm70_vm2, %v61_v7  ;;  %v1730_v10 = vpack.c.bf16 %v159_v9, %v158_v8  ;;  %v1189_v12 = vld [vmem:[%s1928_s3] ss:$0 sm:$0xff]  ;;  %s1624_s3 = smov 32  }
  0x2c   :  { %1368 = vmatprep.subr.bf16.mxu1 %v1620_v0  ;;  %1371 = vmatprep.subr.bf16.mxu0 %v1620_v0  ;;  %v161_v21 = vld [vmem:[%s1932_s7] sm:$0x3]  ;;  %s1625_s7 = smov 96  }
  0x2d   :  { %1373 = vmatpush3.bf16.msra.mxu0 %v1721_v5  ;;  %1285 = vmatprep.mubr.msk.f32.mxu0 %vm1621_vm0, %v1622_v1 }
  0x2e   :  { %1374 = vmatprep.subr.bf16.mxu0 %v1620_v0 }
  0x2f   :  { %1370 = vmatpush3.bf16.msra.mxu1 %v1730_v10 }
  0x30   :  { %1377 = vmatprep.subr.bf16.mxu1 %v1620_v0 }
  0x31   :  { %1376 = vmatpush3.bf16.msra.mxu0 %v1730_v10 }
  0x32   :  { %1275 = vmatmul.mubr.msk.f32.vlgmr.msra.gmra.mrb[0].mxu1 %vm162_vm3, %v160_v11  ;;  %1383 = vmatprep.subr.bf16.mxu0 %v1620_v0 }
  0x33   :  { %1379 = vmatpush3.bf16.msra.mxu1 %v1721_v5  ;;  %1296 = vmatprep.mubr.msk.f32.mxu1 %vm1621_vm0, %v1622_v1 }
  0x34   :  { %1380 = vmatprep.subr.bf16.mxu1 %v1620_v0 }
  0x37   :  { %1382 = vmatpush3.bf16.msra.mxu1 %v1730_v10 }
  0x38   :  { %1389 = vmatprep.subr.bf16.mxu1 %v1620_v0 }
  0xfe   :  { %v1265_v13 = vpop.f32.mrb[0].mxu0 }
  0xff   :  { %v1755_v14 = vadd.f32 %v1265_v13, %v1189_v12  ;;  %v147_v15 = vpop.f32.mrb[1].mxu0 }
 0x100   :  { %v1757_v16 = vadd.f32 %v1189_v12, %v147_v15 }
 0x105   :  { %v232_v17 = vpop.f32.mrb[0].mxu1 }
 0x106   :  { %v236_v18 = vadd.f32 %v232_v17, %v1757_v16  ;;  %v1276_v19 = vpop.f32.mrb[1].mxu1 }
 0x108   :  { %1434 = vtanh.f32 %v236_v18  ;;  %v1194_v22 = vmul.f32 -1.442695, %v236_v18 }
 0x10a   :  { %1436 = vpow2.f32 %v1194_v22 }
 0x112   :  { %v1435_v20 = vpop.eup %1434 }
 0x113   :  { %250 = vrot.lane.b32.xlu0 %v1435_v20, %s1623_s23 }
 0x114   :  { %v1437_v23 = vpop.eup %1436 }
 0x115   :  { %v240_v24 = vadd.f32 1.0, %v1437_v23 }
 0x117   :  { %245 = vrot.lane.b32.xlu0 %v161_v21, %s1624_s3  ;;  %1438 = vrcp.f32 %v240_v24 }
 0x121   :  { %v1439_v25 = vpop.eup %1438 }
 0x185   :  { %v251_v26 = vpop.permute.xlu0 %250 }
 0x186   :  { %v253_v27 = vmul.f32 %v1439_v25, %v251_v26 }
 0x188   :  { %255 = vrot.lane.b32.xlu1 %v253_v27, %s1624_s3 }
 0x189   :  { %v246_v28 = vpop.permute.xlu0 %245 }
 0x18a   :  { %v248_v29 = vmul.f32 %v1439_v25, %v246_v28 }
 0x1fa   :  { %v256_v30 = vpop.permute.xlu1 %255 }
 0x1fb   :  { %v258_v31 = vadd.f32 %v256_v30, %v248_v29 }
 0x1fd   :  { %1440 = vtanh.f32 %v258_v31  ;;  %v355_v47 = vrot.slane %v258_v31, 6 }
 0x207   :  { %v1441_v32 = vpop.eup %1440 }
 0x208   :  { %261 = vrot.lane.b32.xlu1 %v1441_v32, %s1623_s23 }
 0x27a   :  { %v262_v33 = vpop.permute.xlu1 %261 }
 0x27b   :  { %v264_v34 = vmul.f32 %v1439_v25, %v262_v33 }
 0x27d   :  { %266 = vrot.lane.b32.xlu0 %v264_v34, %s1624_s3 }
 0x2ef   :  { %v267_v35 = vpop.permute.xlu0 %266 }
 0x2f0   :  { %270 = vst.msk [vmem:[#allocation2] sm:$0x3] %vm269_vm4, %v267_v35  ;;  %1286 = vmatmul.mubr.msk.f32.vlgmr.msra.gmra.mrb[2].mxu0 %vm162_vm3, %v267_v35 }
 0x2f1   :  { %1385 = vmatpush3.bf16.msra.mxu0 %v1721_v5  ;;  %1307 = vmatprep.mubr.msk.f32.mxu0 %vm1621_vm0, %v1622_v1 }
 0x2f2   :  { %1386 = vmatprep.subr.bf16.mxu0 %v1620_v0 }
 0x2f5   :  { %1388 = vmatpush3.bf16.msra.mxu0 %v1730_v10 }
 0x2f6   :  { %1395 = vmatprep.subr.bf16.mxu0 %v1620_v0 }
 0x3c3   :  { %v339_v36 = vpop.f32.mrb[2].mxu0 }
 0x3c4   :  { %v344_v37 = vrot.slane %v339_v36, 6  ;;  %v1287_v38 = vpop.f32.mrb[3].mxu0 }
 0x3c6   :  { %v346_v39 = vadd.f32 %v344_v37, %v1757_v16 }
 0x3c8   :  { %1442 = vtanh.f32 %v346_v39  ;;  %v1196_v41 = vmul.f32 -1.442695, %v346_v39 }
 0x3ca   :  { %1444 = vpow2.f32 %v1196_v41 }
 0x3d2   :  { %v1443_v40 = vpop.eup %1442 }
 0x3d3   :  { %359 = vrot.lane.b32.xlu1 %v1443_v40, %s1623_s23 }
 0x3d4   :  { %v1445_v42 = vpop.eup %1444 }
 0x3d5   :  { %v350_v43 = vadd.f32 1.0, %v1445_v42 }
 0x3d7   :  { %1446 = vrcp.f32 %v350_v43 }
 0x3e1   :  { %v1447_v44 = vpop.eup %1446 }
 0x3e2   :  { %v357_v48 = vmul.f32 %v1447_v44, %v355_v47 }
 0x445   :  { %v360_v45 = vpop.permute.xlu1 %359 }
 0x446   :  { %v362_v46 = vmul.f32 %v1447_v44, %v360_v45 }
 0x448   :  { %364 = vrot.lane.b32.xlu0 %v362_v46, %s1624_s3 }
 0x4ba   :  { %v365_v49 = vpop.permute.xlu0 %364 }
 0x4bb   :  { %v367_v50 = vadd.f32 %v365_v49, %v357_v48 }
 0x4bd   :  { %1448 = vtanh.f32 %v367_v50  ;;  %v467_v6 = vrot.slane %v367_v50, 6 }
 0x4c7   :  { %v1449_v51 = vpop.eup %1448 }
 0x4c8   :  { %370 = vrot.lane.b32.xlu1 %v1449_v51, %s1623_s23 }
 0x53a   :  { %v371_v52 = vpop.permute.xlu1 %370 }
 0x53b   :  { %v1780_v53 = vmul.f32 %v1447_v44, %v371_v52 }
 0x53d   :  { %v380_v54 = vrot.slane %v1780_v53, 2 }
 0x53f   :  { %381 = vrot.lane.b32.xlu0 %v380_v54, %s1624_s3 }
 0x5b1   :  { %v382_v55 = vpop.permute.xlu0 %381 }
 0x5b2   :  { %1297 = vmatmul.mubr.msk.f32.vlgmr.msra.gmra.mrb[2].mxu1 %vm162_vm3, %v382_v55 }
 0x5b3   :  { %1391 = vmatpush3.bf16.msra.mxu1 %v1721_v5  ;;  %1318 = vmatprep.mubr.msk.f32.mxu1 %vm1621_vm0, %v1622_v1 }
 0x5b4   :  { %1392 = vmatprep.subr.bf16.mxu1 %v1620_v0 }
 0x5b7   :  { %1394 = vmatpush3.bf16.msra.mxu1 %v1730_v10 }
 0x5b8   :  { %1401 = vmatprep.subr.bf16.mxu1 %v1620_v0 }
 0x685   :  { %v451_v56 = vpop.f32.mrb[2].mxu1 }
 0x686   :  { %v456_v57 = vrot.slane %v451_v56, 4  ;;  %v1298_v58 = vpop.f32.mrb[3].mxu1 }
 0x688   :  { %v458_v59 = vadd.f32 %v456_v57, %v1757_v16 }
 0x68a   :  { %1450 = vtanh.f32 %v458_v59  ;;  %v1198_v61 = vmul.f32 -1.442695, %v458_v59 }
 0x68c   :  { %1452 = vpow2.f32 %v1198_v61 }
 0x694   :  { %v1451_v60 = vpop.eup %1450 }
 0x695   :  { %471 = vrot.lane.b32.xlu1 %v1451_v60, %s1623_s23 }
 0x696   :  { %v1453_v62 = vpop.eup %1452 }
 0x697   :  { %v462_v63 = vadd.f32 1.0, %v1453_v62 }
 0x699   :  { %1454 = vrcp.f32 %v462_v63 }
 0x6a3   :  { %v1455_v2 = vpop.eup %1454 }
 0x6a4   :  { %v469_v7 = vmul.f32 %v1455_v2, %v467_v6 }
 0x707   :  { %v472_v3 = vpop.permute.xlu1 %471 }
 0x708   :  { %v474_v4 = vmul.f32 %v1455_v2, %v472_v3 }
 0x70a   :  { %476 = vrot.lane.b32.xlu0 %v474_v4, %s1624_s3 }
 0x77c   :  { %v477_v8 = vpop.permute.xlu0 %476 }
 0x77d   :  { %v479_v9 = vadd.f32 %v477_v8, %v469_v7 }
 0x77f   :  { %1456 = vtanh.f32 %v479_v9  ;;  %v579_v29 = vrot.slane %v479_v9, 6 }
 0x789   :  { %v1457_v11 = vpop.eup %1456 }
 0x78a   :  { %482 = vrot.lane.b32.xlu1 %v1457_v11, %s1623_s23 }
 0x7fc   :  { %v483_v12 = vpop.permute.xlu1 %482 }
 0x7fd   :  { %v1795_v13 = vmul.f32 %v1455_v2, %v483_v12 }
 0x7ff   :  { %v492_v15 = vrot.slane %v1795_v13, 4 }
 0x801   :  { %493 = vrot.lane.b32.xlu0 %v492_v15, %s1624_s3 }
 0x873   :  { %v494_v17 = vpop.permute.xlu0 %493 }
 0x874   :  { %1308 = vmatmul.mubr.msk.f32.vlgmr.msra.gmra.mrb[4].mxu0 %vm162_vm3, %v494_v17 }
 0x875   :  { %1397 = vmatpush3.bf16.msra.mxu0 %v1721_v5  ;;  %1329 = vmatprep.mubr.msk.f32.mxu0 %vm1621_vm0, %v1622_v1 }
 0x876   :  { %1398 = vmatprep.subr.bf16.mxu0 %v1620_v0 }
 0x879   :  { %1400 = vmatpush3.bf16.msra.mxu0 %v1730_v10 }
 0x87a   :  { %1407 = vmatprep.subr.bf16.mxu0 %v1620_v0 }
 0x947   :  { %v563_v18 = vpop.f32.mrb[4].mxu0 }
 0x948   :  { %v568_v19 = vrot.slane %v563_v18, 2  ;;  %v1309_v20 = vpop.f32.mrb[5].mxu0 }
 0x94a   :  { %v570_v21 = vadd.f32 %v568_v19, %v1757_v16 }
 0x94c   :  { %1458 = vtanh.f32 %v570_v21  ;;  %v1200_v23 = vmul.f32 -1.442695, %v570_v21 }
 0x94e   :  { %1460 = vpow2.f32 %v1200_v23 }
 0x956   :  { %v1459_v22 = vpop.eup %1458 }
 0x957   :  { %583 = vrot.lane.b32.xlu1 %v1459_v22, %s1623_s23 }
 0x958   :  { %v1461_v24 = vpop.eup %1460 }
 0x959   :  { %v574_v25 = vadd.f32 1.0, %v1461_v24 }
 0x95b   :  { %1462 = vrcp.f32 %v574_v25 }
 0x965   :  { %v1463_v26 = vpop.eup %1462 }
 0x966   :  { %v581_v30 = vmul.f32 %v1463_v26, %v579_v29 }
 0x9c9   :  { %v584_v27 = vpop.permute.xlu1 %583 }
 0x9ca   :  { %v586_v28 = vmul.f32 %v1463_v26, %v584_v27 }
 0x9cc   :  { %588 = vrot.lane.b32.xlu0 %v586_v28, %s1624_s3 }
 0xa3e   :  { %v589_v31 = vpop.permute.xlu0 %588 }
 0xa3f   :  { %v591_v32 = vadd.f32 %v589_v31, %v581_v30 }
 0xa41   :  { %1464 = vtanh.f32 %v591_v32  ;;  %v688_v47 = vrot.slane %v591_v32, 6 }
 0xa4b   :  { %v1465_v16 = vpop.eup %1464 }
 0xa4c   :  { %594 = vrot.lane.b32.xlu1 %v1465_v16, %s1623_s23 }
 0xabe   :  { %v595_v33 = vpop.permute.xlu1 %594 }
 0xabf   :  { %v1810_v34 = vmul.f32 %v1463_v26, %v595_v33 }
 0xac1   :  { %v604_v35 = vrot.slane %v1810_v34, 6 }
 0xac3   :  { %605 = vrot.lane.b32.xlu0 %v604_v35, %s1624_s3 }
 0xb35   :  { %v606_v36 = vpop.permute.xlu0 %605 }
 0xb36   :  { %1319 = vmatmul.mubr.msk.f32.vlgmr.msra.gmra.mrb[4].mxu1 %vm162_vm3, %v606_v36 }
 0xb37   :  { %1403 = vmatpush3.bf16.msra.mxu1 %v1721_v5  ;;  %1340 = vmatprep.mubr.msk.f32.mxu1 %vm1621_vm0, %v1622_v1 }
 0xb38   :  { %1404 = vmatprep.subr.bf16.mxu1 %v1620_v0 }
 0xb3b   :  { %1406 = vmatpush3.bf16.msra.mxu1 %v1730_v10 }
 0xc09   :  { %v675_v37 = vpop.f32.mrb[4].mxu1 }
 0xc0a   :  { %v679_v38 = vadd.f32 %v675_v37, %v1755_v14  ;;  %v1320_v39 = vpop.f32.mrb[5].mxu1 }
 0xc0c   :  { %1466 = vtanh.f32 %v679_v38  ;;  %v1202_v41 = vmul.f32 -1.442695, %v679_v38 }
 0xc0e   :  { %1468 = vpow2.f32 %v1202_v41 }
 0xc16   :  { %v1467_v40 = vpop.eup %1466 }
 0xc17   :  { %692 = vrot.lane.b32.xlu1 %v1467_v40, %s1623_s23 }
 0xc18   :  { %v1469_v42 = vpop.eup %1468 }
 0xc19   :  { %v683_v43 = vadd.f32 1.0, %v1469_v42 }
 0xc1b   :  { %1470 = vrcp.f32 %v683_v43 }
 0xc25   :  { %v1471_v44 = vpop.eup %1470 }
 0xc26   :  { %v690_v48 = vmul.f32 %v1471_v44, %v688_v47 }
 0xc89   :  { %v693_v45 = vpop.permute.xlu1 %692 }
 0xc8a   :  { %v695_v46 = vmul.f32 %v1471_v44, %v693_v45 }
 0xc8c   :  { %697 = vrot.lane.b32.xlu0 %v695_v46, %s1624_s3 }
 0xcfe   :  { %v698_v49 = vpop.permute.xlu0 %697 }
 0xcff   :  { %v700_v50 = vadd.f32 %v698_v49, %v690_v48 }
 0xd01   :  { %1472 = vtanh.f32 %v700_v50 }
 0xd0b   :  { %v1473_v51 = vpop.eup %1472 }
 0xd0c   :  { %703 = vrot.lane.b32.xlu1 %v1473_v51, %s1623_s23  ;;  %v1050_v51 = vld [vmem:[%s1929_s4] sm:$0xff] }
 0xd7e   :  { %v704_v52 = vpop.permute.xlu1 %703 }
 0xd7f   :  { %v706_v54 = vmul.f32 %v1471_v44, %v704_v52  ;;  %v1051_v52 = vld [vmem:[%s1929_s4 + $0x8] sm:$0xff] }
 0xd81   :  { %708 = vrot.lane.b32.xlu0 %v706_v54, %s1624_s3  ;;  %v1413_v54 = vpack.c.bf16 %v1051_v52, %v1050_v51 }
 0xd83   :  { %1414 = vmatprep.subr.bf16.mxu1 %v1413_v54 }
 0xdf3   :  { %v709_v55 = vpop.permute.xlu0 %708 }
 0xdf4   :  { %711 = vst.msk [vmem:[#allocation2 + $0x8] sm:$0x3] %vm269_vm4, %v709_v55  ;;  %1330 = vmatmul.mubr.msk.f32.vlgmr.msra.gmra.mrb[6].mxu0 %vm162_vm3, %v709_v55 }
 0xdf5   :  { %1409 = vmatpush3.bf16.msra.mxu0 %v1721_v5  ;;  %1351 = vmatprep.mubr.msk.f32.mxu0 %vm1621_vm0, %v1622_v1 }
 0xdf6   :  { %1410 = vmatprep.subr.bf16.mxu0 %v1620_v0  ;;  %v796_v0 = vrot.slane %v700_v50, 6 }
 0xdf9   :  { %1412 = vmatpush3.bf16.msra.mxu0 %v1730_v10 }
 0xec7   :  { %v780_v56 = vpop.f32.mrb[6].mxu0 }
 0xec8   :  { %v785_v57 = vrot.slane %v780_v56, 6  ;;  %v1331_v58 = vpop.f32.mrb[7].mxu0  ;;  %v1053_v56 = vld [vmem:[%s1929_s4 + $0x18] sm:$0xff] }
 0xeca   :  { %v787_v59 = vadd.f32 %v785_v57, %v1755_v14 }
 0xecc   :  { %1474 = vtanh.f32 %v787_v59  ;;  %v1204_v61 = vmul.f32 -1.442695, %v787_v59 }
 0xece   :  { %1476 = vpow2.f32 %v1204_v61 }
 0xed6   :  { %v1475_v60 = vpop.eup %1474 }
 0xed7   :  { %800 = vrot.lane.b32.xlu1 %v1475_v60, %s1623_s23 }
 0xed8   :  { %v1477_v62 = vpop.eup %1476 }
 0xed9   :  { %v791_v5 = vadd.f32 1.0, %v1477_v62 }
 0xedb   :  { %1478 = vrcp.f32 %v791_v5 }
 0xee5   :  { %v1479_v63 = vpop.eup %1478 }
 0xee6   :  { %v798_v10 = vmul.f32 %v1479_v63, %v796_v0 }
 0xf49   :  { %v801_v1 = vpop.permute.xlu1 %800 }
 0xf4a   :  { %v803_v2 = vmul.f32 %v1479_v63, %v801_v1 }
 0xf4c   :  { %805 = vrot.lane.b32.xlu0 %v803_v2, %s1624_s3 }
 0xfbe   :  { %v806_v3 = vpop.permute.xlu0 %805 }
 0xfbf   :  { %v808_v4 = vadd.f32 %v806_v3, %v798_v10 }
 0xfc1   :  { %1480 = vtanh.f32 %v808_v4  ;;  %v907_v26 = vrot.slane %v808_v4, 6 }
 0xfcb   :  { %v1481_v6 = vpop.eup %1480 }
 0xfcc   :  { %811 = vrot.lane.b32.xlu1 %v1481_v6, %s1623_s23 }
0x103e   :  { %v812_v7 = vpop.permute.xlu1 %811 }
0x103f   :  { %v1836_v8 = vmul.f32 %v1479_v63, %v812_v7 }
0x1041   :  { %v820_v9 = vrot.slane %v1836_v8, 2 }
0x1043   :  { %821 = vrot.lane.b32.xlu0 %v820_v9, %s1624_s3 }
0x10b5   :  { %v822_v11 = vpop.permute.xlu0 %821 }
0x10b6   :  { %1341 = vmatmul.mubr.msk.f32.vlgmr.msra.gmra.mrb[6].mxu1 %vm162_vm3, %v822_v11 }
0x10b7   :  { %1416 = vmatpush3.bf16.msra.mxu1 %v1413_v54 }
0x1189   :  { %v891_v12 = vpop.f32.mrb[6].mxu1 }
0x118a   :  { %v896_v15 = vrot.slane %v891_v12, 4  ;;  %v1342_v17 = vpop.f32.mrb[7].mxu1 }
0x118c   :  { %v898_v18 = vadd.f32 %v896_v15, %v1755_v14 }
0x118e   :  { %1482 = vtanh.f32 %v898_v18  ;;  %v1206_v20 = vmul.f32 -1.442695, %v898_v18 }
0x1190   :  { %1484 = vpow2.f32 %v1206_v20 }
0x1198   :  { %v1483_v19 = vpop.eup %1482 }
0x1199   :  { %911 = vrot.lane.b32.xlu1 %v1483_v19, %s1623_s23 }
0x119a   :  { %v1485_v21 = vpop.eup %1484 }
0x119b   :  { %v902_v22 = vadd.f32 1.0, %v1485_v21 }
0x119d   :  { %1486 = vrcp.f32 %v902_v22 }
0x11a7   :  { %v1487_v23 = vpop.eup %1486 }
0x11a8   :  { %v909_v27 = vmul.f32 %v1487_v23, %v907_v26 }
0x120b   :  { %v912_v24 = vpop.permute.xlu1 %911 }
0x120c   :  { %v914_v25 = vmul.f32 %v1487_v23, %v912_v24 }
0x120e   :  { %916 = vrot.lane.b32.xlu0 %v914_v25, %s1624_s3 }
0x1280   :  { %v917_v28 = vpop.permute.xlu0 %916 }
0x1281   :  { %v919_v29 = vadd.f32 %v917_v28, %v909_v27 }
0x1283   :  { %1488 = vtanh.f32 %v919_v29 }
0x128d   :  { %v1489_v30 = vpop.eup %1488 }
0x128e   :  { %922 = vrot.lane.b32.xlu1 %v1489_v30, %s1623_s23 }
0x1300   :  { %v923_v31 = vpop.permute.xlu1 %922 }
0x1301   :  { %v925_v32 = vmul.f32 %v1487_v23, %v923_v31 }
0x1303   :  { %v931_v16 = vrot.slane %v925_v32, 4 }
0x1305   :  { %932 = vrot.lane.b32.xlu0 %v931_v16, %s1624_s3 }
0x1377   :  { %v933_v33 = vpop.permute.xlu0 %932 }
0x1378   :  { %1352 = vmatmul.mubr.msk.f32.vlgmr.msra.gmra.mrb[8].mxu0 %vm162_vm3, %v933_v33 }
0x144b   :  { %v1002_v35 = vpop.f32.mrb[8].mxu0 }
0x144c   :  { %v1007_v36 = vrot.slane %v1002_v35, 2  ;;  %v1353_v37 = vpop.f32.mrb[9].mxu0 }
0x144e   :  { %v1009_v38 = vadd.f32 %v1007_v36, %v1755_v14  ;;  %v1018_v14 = vrot.slane %v919_v29, 6 }
0x1450   :  { %1490 = vtanh.f32 %v1009_v38  ;;  %v1208_v40 = vmul.f32 -1.442695, %v1009_v38 }
0x1452   :  { %1492 = vpow2.f32 %v1208_v40 }
0x145a   :  { %v1491_v39 = vpop.eup %1490 }
0x145b   :  { %1022 = vrot.lane.b32.xlu1 %v1491_v39, %s1623_s23 }
0x145c   :  { %v1493_v41 = vpop.eup %1492 }
0x145d   :  { %v1013_v42 = vadd.f32 1.0, %v1493_v41 }
0x145f   :  { %1494 = vrcp.f32 %v1013_v42 }
0x1469   :  { %v1495_v43 = vpop.eup %1494 }
0x146a   :  { %v1020_v46 = vmul.f32 %v1495_v43, %v1018_v14 }
0x14cd   :  { %v1023_v44 = vpop.permute.xlu1 %1022 }
0x14ce   :  { %v1025_v45 = vmul.f32 %v1495_v43, %v1023_v44 }
0x14d0   :  { %1027 = vrot.lane.b32.xlu0 %v1025_v45, %s1624_s3 }
0x14d4   :  { %375 = vrot.lane.b32.xlu0 %v1780_v53, %s1624_s3 }
0x14d8   :  { %599 = vrot.lane.b32.xlu0 %v1810_v34, %s1624_s3 }
0x14dc   :  { %927 = vrot.lane.b32.xlu0 %v925_v32, %s1624_s3 }
0x1542   :  { %v1028_v47 = vpop.permute.xlu0 %1027 }
0x1543   :  { %v1030_v48 = vadd.f32 %v1028_v47, %v1020_v46 }
0x1545   :  { %1496 = vtanh.f32 %v1030_v48  ;;  %1044 = vrot.lane.b32.xlu0 %v1030_v48, %s1625_s7 }
0x1546   :  { %v376_v49 = vpop.permute.xlu0 %375 }
0x1547   :  { %379 = vst.msk [vmem:[#allocation2] sm:$0xc] %vm378_vm5, %v376_v49 }
0x154a   :  { %v600_v50 = vpop.permute.xlu0 %599 }
0x154b   :  { %603 = vst.msk [vmem:[#allocation2] sm:$0xc0] %vm602_vm6, %v600_v50 }
0x154e   :  { %v928_v53 = vpop.permute.xlu0 %927 }
0x154f   :  { %v1497_v34 = vpop.eup %1496  ;;  %930 = vst.msk [vmem:[#allocation2 + $0x8] sm:$0x30] %vm490_vm7, %v928_v53 }
0x1550   :  { %1033 = vrot.lane.b32.xlu1 %v1497_v34, %s1623_s23 }
0x1554   :  { %487 = vrot.lane.b32.xlu1 %v1795_v13, %s1624_s3  ;;  %v1052_v13 = vld [vmem:[%s1929_s4 + $0x10] sm:$0xff]  ;;  %s1626_s4 = smov [#allocation9]  }
0x1555   :  { %v1417_v57 = vpack.c.bf16 %v1053_v56, %v1052_v13  ;;  %s1162_s15 = sshll.u32 %s1626_s4, 4  ;;  %s1163_s15 = int_to_ptr.vmem [resolvable:$true] %s1162_s15 }
0x1556   :  { %s1542_s17 = scalar_lea.vmem %s1163_s15, 32  ;;  %p1547_p3 = scmp.lt.s32.totalorder %s1163_s15, %s1163_s15 }
0x1557   :  { %1418 = vmatprep.subr.bf16.mxu1 %v1417_v57  ;;  %p1543_p2 = scmp.ne.s32.totalorder %s1163_s15, %s1542_s17  ;;  %p1548_p4 = scmp.lt.s32.totalorder %s1542_s17, %s1542_s17 }
0x1558   :  { %816 = vrot.lane.b32.xlu1 %v1836_v8, %s1624_s3  ;;  %1420 = vmatpush3.bf16.msra.mxu1 %v1417_v57 }
0x1559   :  { %p1549_p5 = por %p1548_p4, %p1547_p3 }
0x155b   :  { %p1550_p6 = pnand %p1549_p5, %p1543_p2 }
0x15b7   :  { %v1045_v55 = vpop.permute.xlu0 %1044 }
0x15b8   :  { %1047 = vst.msk [vmem:[#allocation11 - $0x6] sm:$0xc0] %vm602_vm6, %v1045_v55 }
0x15c2   :  { %v1034_v58 = vpop.permute.xlu1 %1033 }
0x15c3   :  { %v1036_v59 = vmul.f32 %v1495_v43, %v1034_v58 }
0x15c5   :  { %1038 = vrot.lane.b32.xlu1 %v1036_v59, %s1624_s3 }
0x15c6   :  { %v488_v60 = vpop.permute.xlu1 %487 }
0x15c7   :  { %491 = vst.msk [vmem:[#allocation2] sm:$0x30] %vm490_vm7, %v488_v60 }
0x15ca   :  { %v817_v61 = vpop.permute.xlu1 %816 }
0x15cb   :  { %819 = vst.msk [vmem:[#allocation2 + $0x8] sm:$0xc] %vm378_vm5, %v817_v61 }
0x15ce   :  { %v1048_v62 = vld [vmem:[#allocation2] sm:$0xff] }
0x15cf   :  { %1362 = vmatprep.mubr.msk.f32.mxu1 %vm162_vm3, %v1048_v62 }
0x1637   :  { %v1039_v5 = vpop.permute.xlu1 %1038 }
0x1638   :  { %1041 = vst.msk [vmem:[#allocation2 + $0x8] sm:$0xc0] %vm602_vm6, %v1039_v5  ;;  %1042 = vst.msk [vmem:[#allocation9 - $0x6] sm:$0xc0] %vm602_vm6, %v1039_v5 }
0x163f   :  { %v1049_v63 = vld [vmem:[#allocation2 + $0x8] sm:$0xff] }
0x1640   :  { %1363 = vmatmul.mubr.msk.f32.vlgmr.msra.gmra.mrb[8].mxu1 %vm162_vm3, %v1049_v63 }
0x1641   :  { %1553 = shalt.err (!%p1550_p6)
}
0x1642   :  { %s1554_s16 = scalar_lea.hbm %s1934_s9, 32 }
0x1643   :  { %p1555_p7 = scmp.ne.s32.totalorder %s1934_s9, %s1554_s16  ;;  %p1558_p8 = scmp.lt.u32.totalorder %s1554_s16, %s1934_s9 }
0x1645   :  { %p1560_p9 = pnand %p1558_p8, %p1555_p7 }
0x1647   :  { %1563 = shalt.err (!%p1560_p9)
}
0x1648   :  { %1165 = dma.vmem_to_hbm [thread:$0]  %s1163_s15, 32, %s1934_s9, [#allocation10]  }
0x1649   :  { %s1627_s23 = smov [#allocation11]  }
0x164a   :  { %s1172_s24 = sshll.u32 %s1627_s23, 4  ;;  %s1173_s24 = int_to_ptr.vmem [resolvable:$true] %s1172_s24 }
0x164b   :  { %s1564_s25 = scalar_lea.vmem %s1173_s24, 32  ;;  %p1569_p11 = scmp.lt.s32.totalorder %s1173_s24, %s1173_s24 }
0x164c   :  { %p1565_p10 = scmp.ne.s32.totalorder %s1173_s24, %s1564_s25  ;;  %p1570_p12 = scmp.lt.s32.totalorder %s1564_s25, %s1564_s25 }
0x164e   :  { %p1571_p13 = por %p1570_p12, %p1569_p11 }
0x1650   :  { %p1572_p0 = pnand %p1571_p13, %p1565_p10 }
0x1652   :  { %1575 = shalt.err (!%p1572_p0)
}
0x1653   :  { %s1576_s26 = scalar_lea.hbm %s1935_s10, 32 }
0x1654   :  { %p1577_p1 = scmp.ne.s32.totalorder %s1935_s10, %s1576_s26  ;;  %p1580_p2 = scmp.lt.u32.totalorder %s1576_s26, %s1935_s10 }
0x1656   :  { %p1582_p3 = pnand %p1580_p2, %p1577_p1 }
0x1658   :  { %1585 = shalt.err (!%p1582_p3)
}
0x1659   :  { %1175 = dma.vmem_to_hbm [thread:$0]  %s1173_s24, 32, %s1935_s10, [#allocation10]   ;;  %v1209_v1 = vld [vmem:[%s1930_s5] ss:$0 sm:$0xff] }
0x165a   :  { %s1628_s4 = smov [#allocation8]  }
0x165b   :  { %s1149_s15 = sshll.u32 %s1628_s4, 4  ;;  %s1150_s15 = int_to_ptr.vmem [resolvable:$true] %s1149_s15 }
0x165c   :  { %s1586_s17 = scalar_lea.vmem %s1150_s15, 256  ;;  %p1591_p5 = scmp.lt.s32.totalorder %s1150_s15, %s1150_s15 }
0x165d   :  { %p1587_p4 = scmp.ne.s32.totalorder %s1150_s15, %s1586_s17  ;;  %p1592_p6 = scmp.lt.s32.totalorder %s1586_s17, %s1586_s17 }
0x165f   :  { %p1593_p7 = por %p1592_p6, %p1591_p5 }
0x1661   :  { %p1594_p8 = pnand %p1593_p7, %p1587_p4 }
0x1713   :  { %v1364_v2 = vpop.f32.mrb[8].mxu1 }
0x1714   :  { %v1139_v0 = vadd.f32 %v1364_v2, %v1209_v1  ;;  %v1133_v10 = vpop.f32.mrb[9].mxu1 }
0x1715   :  { %v1134_v3 = vadd.f32 %v1209_v1, %v1133_v10 }
0x1716   :  { %1143 = vst [vmem:[#allocation8 + $0x8] sm:$0xff] %v1139_v0 }
0x1717   :  { %1142 = vst [vmem:[#allocation8] sm:$0xff] %v1134_v3 }
0x1718   :  { %1597 = shalt.err (!%p1594_p8)
}
0x1719   :  { %s1598_s5 = scalar_lea.hbm %s1933_s8, 256 }
0x171a   :  { %p1599_p9 = scmp.ne.s32.totalorder %s1933_s8, %s1598_s5  ;;  %p1602_p10 = scmp.lt.u32.totalorder %s1598_s5, %s1933_s8 }
0x171c   :  { %p1604_p11 = pnand %p1602_p10, %p1599_p9 }
0x171e   :  { %1607 = shalt.err (!%p1604_p11)
}
0x171f   :  { %1155 = dma.vmem_to_hbm [thread:$0]  %s1150_s15, 256, %s1933_s8, [#allocation5], %s1618_s1, %s1618_s1, %s1619_s14  }
0x1720   :  { %1612 = dma.done.wait [#allocation5], 256  }
0x1721   :  { %1613 = vsyncadd [#allocation5], 4294967040 }
0x1722   :  { %1614 = dma.done.wait [#allocation10], 64  }
0x1723   :  { %1615 = vsyncadd [#allocation10], 4294967232 }
0x1724   :  { %1185 = vsyncpa [#allocation4], 1 }
0x1725   :  { %1186 = vsyncpa [#allocation7], 1 }
0x1726   :  { %1187 = vsyncpa [#allocation5], 1 }
0x1727   :  { %1188 = vsyncpa [#allocation10], 1 }

</bundles_post_ra>
